<compile_context>
chip_gen: v7x
topology: tpu7x:2x2x1
jax: 0.10.0
libtpu: 0.0.40
codegen_flags: <defaults>
</compile_context>

<pallas_src>
import jax
import jax.numpy as jnp
from jax import lax
from jax.experimental import pallas as pl
from jax.experimental.pallas import tpu as pltpu


def _bin_rot_loss_kernel(feat_ref, ints_ref, flts_ref, out_ref):
    """Per-image partial sums of the rotation loss.

    feat_ref: (8, HW)  f32  rot head of this image in native (C, H*W) layout.
    ints_ref: (3, K)   i32  rows = [ind, rotbin0, rotbin1]          (K on lanes)
    flts_ref: (5, K)   f32  rows = [mask, sin(res0), cos(res0), sin(res1), cos(res1)]
    out_ref : (8, 1)   f32  [ce1_sum, ce2_sum, res1_sum, res2_sum, cnt1, cnt2, 0, 0]
    """
    feat = feat_ref[...]                       # (8, HW)
    ints = ints_ref[...]                       # (3, K) int32
    flts = flts_ref[...]                       # (5, K) f32

    hw = feat.shape[1]
    k = ints.shape[1]

    ind = ints[0:1, :]                         # (1, K) spatial indices in [0, HW)
    tbin0 = ints[1:2, :]
    tbin1 = ints[2:3, :]
    m = flts[0:1, :]
    sin0, cos0 = flts[1:2, :], flts[2:3, :]
    sin1, cos1 = flts[3:4, :], flts[4:5, :]

    # ---- gather: pred (8, K) = feat (8, HW) @ onehot (HW, K)  (K on MXU output lanes) ----
    row_ids = lax.broadcasted_iota(jnp.int32, (hw, k), 0)
    onehot = (row_ids == ind).astype(jnp.float32)          # exactly one 1 per column
    pred = jnp.dot(feat, onehot,
                   preferred_element_type=jnp.float32,
                   precision=lax.Precision.HIGHEST)        # exact (no bf16 rounding)

    # ---- 2-class CE of masked logits: ce = softplus(z_other - z_picked) ----
    def softplus(x):
        return jnp.maximum(x, 0.0) + jnp.log(1.0 + jnp.exp(-jnp.abs(x)))

    def ce_row(l0, l1, t):
        z0 = l0 * m
        z1 = l1 * m
        diff = jnp.where(t == 0, z1 - z0, z0 - z1)
        return softplus(diff)                               # (1, K)

    sp1 = ce_row(pred[0:1, :], pred[1:2, :], tbin0)
    sp2 = ce_row(pred[4:5, :], pred[5:6, :], tbin1)

    # ---- residual smooth-L1 terms, masked by bin validity ----
    def smooth_l1(x):
        ax = jnp.abs(x)
        return jnp.where(ax < 1.0, 0.5 * x * x, ax - 0.5)

    v1 = (tbin0 != 0).astype(jnp.float32)
    v2 = (tbin1 != 0).astype(jnp.float32)
    r1 = v1 * (smooth_l1(pred[2:3, :] - sin0) + smooth_l1(pred[3:4, :] - cos0))
    r2 = v2 * (smooth_l1(pred[6:7, :] - sin1) + smooth_l1(pred[7:8, :] - cos1))

    # ---- single fused lane-reduction for all six partial sums ----
    zeros = jnp.zeros_like(sp1)
    stacked = jnp.concatenate([sp1, sp2, r1, r2, v1, v2, zeros, zeros], axis=0)  # (8, K)
    out_ref[...] = jnp.sum(stacked, axis=1, keepdims=True)                       # (8, 1)


@jax.jit
def bin_rot_loss_pallas(output, mask, ind, rotbin, rotres):
    """output: (B, 8, H, W); mask: (B, K); ind: (B, K) in [0, H*W);
       rotbin: (B, K, 2) int; rotres: (B, K, 2) float. Returns scalar f32 loss."""
    B, C, H, W = output.shape
    assert C == 8, "BinRotLoss expects 8 rotation channels"
    K = ind.shape[1]
    HW = H * W

    # Native layout, free reshape (no transpose / no HBM round-trip of the feature map).
    feat = output.reshape(B, C, HW).astype(jnp.float32)

    # Pack the tiny per-row operands lane-dense (rows on lanes) -> 2 operands, 2 DMAs.
    ind_i = ind.astype(jnp.int32)
    rb = rotbin.astype(jnp.int32)
    rr = rotres.astype(jnp.float32)
    ints = jnp.stack([ind_i, rb[..., 0], rb[..., 1]], axis=1)                 # (B, 3, K)
    flts = jnp.stack([mask.astype(jnp.float32),
                      jnp.sin(rr[..., 0]), jnp.cos(rr[..., 0]),
                      jnp.sin(rr[..., 1]), jnp.cos(rr[..., 1])], axis=1)      # (B, 5, K)

    partials = pl.pallas_call(
        _bin_rot_loss_kernel,
        out_shape=jax.ShapeDtypeStruct((B, 8, 1), jnp.float32),
        grid=(B,),
        in_specs=[
            pl.BlockSpec((None, C, HW), lambda b: (b, 0, 0)),   # one (8, HW) slab per step
            pl.BlockSpec((None, 3, K), lambda b: (b, 0, 0)),
            pl.BlockSpec((None, 5, K), lambda b: (b, 0, 0)),
        ],
        out_specs=pl.BlockSpec((None, 8, 1), lambda b: (b, 0, 0)),
        compiler_params=pltpu.CompilerParams(
            dimension_semantics=("parallel",),                  # megacore shards B on v7x
            vmem_limit_bytes=64 * 1024 * 1024),                 # explicit budget (<= v7x phys)
    )(feat, ints, flts)

    # Tiny scalar epilogue (kept outside the kernel so the B grid axis stays parallel-safe).
    sums = jnp.sum(partials.reshape(B, 8), axis=0)
    n_rows = jnp.float32(B * K)
    loss_bin = (sums[0] + sums[1]) / n_rows
    loss_res1 = jnp.where(sums[4] > 0, sums[2] / jnp.maximum(sums[4], 1.0), 0.0)
    loss_res2 = jnp.where(sums[5] > 0, sums[3] / jnp.maximum(sums[5], 1.0), 0.0)
    return loss_bin + loss_res1 + loss_res2


def bin_rot_loss_ref(output, mask, ind, rotbin, rotres):
    """Pure-JAX reference mirroring the PyTorch module."""
    B, C, H, W = output.shape
    feat = jnp.transpose(output, (0, 2, 3, 1)).reshape(B, H * W, C)
    pred = jnp.take_along_axis(feat, ind[..., None].astype(jnp.int32), axis=1)
    pred = pred.reshape(-1, 8).astype(jnp.float32)
    tbin = rotbin.reshape(-1, 2).astype(jnp.int32)
    tres = rotres.reshape(-1, 2).astype(jnp.float32)
    m = mask.reshape(-1, 1).astype(jnp.float32)

    def ce(logits, tgt):
        logits = logits * m
        lse = jax.scipy.special.logsumexp(logits, axis=1)
        picked = jnp.take_along_axis(logits, tgt[:, None], axis=1)[:, 0]
        return jnp.mean(lse - picked)

    loss_bin1 = ce(pred[:, 0:2], tbin[:, 0])
    loss_bin2 = ce(pred[:, 4:6], tbin[:, 1])

    def sl1(x):
        ax = jnp.abs(x)
        return jnp.where(ax < 1.0, 0.5 * x * x, ax - 0.5)

    def res_term(sin_col, valid, ang):
        cnt = jnp.sum(valid)
        denom = jnp.maximum(cnt, 1.0)
        s = jnp.sum(valid * sl1(pred[:, sin_col] - jnp.sin(ang))) / denom
        c = jnp.sum(valid * sl1(pred[:, sin_col + 1] - jnp.cos(ang))) / denom
        return jnp.where(cnt > 0, s + c, 0.0)

    v1 = (tbin[:, 0] != 0).astype(jnp.float32)
    v2 = (tbin[:, 1] != 0).astype(jnp.float32)
    loss_res = res_term(2, v1, tres[:, 0]) + res_term(6, v2, tres[:, 1])
    return loss_bin1 + loss_bin2 + loss_res


if __name__ == "__main__":
    key = jax.random.PRNGKey(0)
    B, C, H, W, K = 2, 8, 16, 16, 8
    k1, k2, k3, k4 = jax.random.split(key, 4)

    output = jax.random.normal(k1, (B, C, H, W), dtype=jnp.float32)
    ind = jax.random.randint(k2, (B, K), 0, H * W, dtype=jnp.int32)
    # Some valid objects per image, the rest masked out.
    mask = (jnp.arange(K)[None, :] < jnp.array([[6], [4]])).astype(jnp.float32)
    rotbin = jax.random.randint(k3, (B, K, 2), 0, 2, dtype=jnp.int32)
    rotres = jax.random.uniform(k4, (B, K, 2), minval=-3.14159, maxval=3.14159,
                                dtype=jnp.float32)

    loss = bin_rot_loss_pallas(output, mask, ind, rotbin, rotres)
    loss = jax.block_until_ready(loss)

    ref = bin_rot_loss_ref(output, mask, ind, rotbin, rotres)
    assert jnp.allclose(loss, ref, atol=1e-4, rtol=1e-4), (loss, ref)

    print("KERNEL_OK")
</pallas_src>

<mosaic_0001>
module attributes {stable_mosaic.version = 11 : i64} {
  func.func @_bin_rot_loss_kernel(%arg0: i32, %arg1: memref<1x8x256xf32, #tpu.memory_space<vmem>>, %arg2: memref<1x3x8xi32, #tpu.memory_space<vmem>>, %arg3: memref<1x5x8xf32, #tpu.memory_space<vmem>>, %arg4: memref<1x8x1xf32, #tpu.memory_space<vmem>>) attributes {dimension_semantics = [#tpu.dimension_semantics<parallel>], iteration_bounds = array<i64: 2>, scalar_prefetch = 0 : i64, scratch_operands = 0 : i64, tpu.core_type = #tpu.core_type<tc>, window_params = [{transform_indices = @transform_0, window_bounds = array<i64: 1, 8, 256>}, {transform_indices = @transform_1, window_bounds = array<i64: 1, 3, 8>}, {transform_indices = @transform_2, window_bounds = array<i64: 1, 5, 8>}, {transform_indices = @transform_3, window_bounds = array<i64: 1, 8, 1>}]} {
    %c0 = arith.constant 0 : index
    %c0_0 = arith.constant 0 : index
    %c0_1 = arith.constant 0 : index
    %0 = vector.load %arg1[%c0, %c0_0, %c0_1] : memref<1x8x256xf32, #tpu.memory_space<vmem>>, vector<1x8x256xf32>
    %1 = vector.shape_cast %0 : vector<1x8x256xf32> to vector<8x256xf32>
    %c0_2 = arith.constant 0 : index
    %c0_3 = arith.constant 0 : index
    %c0_4 = arith.constant 0 : index
    %2 = vector.load %arg2[%c0_2, %c0_3, %c0_4] : memref<1x3x8xi32, #tpu.memory_space<vmem>>, vector<1x3x8xi32>
    %3 = vector.shape_cast %2 : vector<1x3x8xi32> to vector<3x8xi32>
    %c0_5 = arith.constant 0 : index
    %c0_6 = arith.constant 0 : index
    %c0_7 = arith.constant 0 : index
    %4 = vector.load %arg3[%c0_5, %c0_6, %c0_7] : memref<1x5x8xf32, #tpu.memory_space<vmem>>, vector<1x5x8xf32>
    %5 = vector.shape_cast %4 : vector<1x5x8xf32> to vector<5x8xf32>
    %6 = vector.extract_strided_slice %3 {offsets = [0, 0], sizes = [1, 8], strides = [1, 1]} : vector<3x8xi32> to vector<1x8xi32>
    %7 = vector.extract_strided_slice %3 {offsets = [1, 0], sizes = [1, 8], strides = [1, 1]} : vector<3x8xi32> to vector<1x8xi32>
    %8 = vector.extract_strided_slice %3 {offsets = [2, 0], sizes = [1, 8], strides = [1, 1]} : vector<3x8xi32> to vector<1x8xi32>
    %9 = vector.extract_strided_slice %5 {offsets = [0, 0], sizes = [1, 8], strides = [1, 1]} : vector<5x8xf32> to vector<1x8xf32>
    %10 = vector.extract_strided_slice %5 {offsets = [1, 0], sizes = [1, 8], strides = [1, 1]} : vector<5x8xf32> to vector<1x8xf32>
    %11 = vector.extract_strided_slice %5 {offsets = [2, 0], sizes = [1, 8], strides = [1, 1]} : vector<5x8xf32> to vector<1x8xf32>
    %12 = vector.extract_strided_slice %5 {offsets = [3, 0], sizes = [1, 8], strides = [1, 1]} : vector<5x8xf32> to vector<1x8xf32>
    %13 = vector.extract_strided_slice %5 {offsets = [4, 0], sizes = [1, 8], strides = [1, 1]} : vector<5x8xf32> to vector<1x8xf32>
    %14 = tpu.iota {dimensions = array<i32: 0>} : vector<256x8xi32>
    %15 = vector.broadcast %6 : vector<1x8xi32> to vector<256x8xi32>
    %16 = arith.cmpi eq, %14, %15 : vector<256x8xi32>
    %17 = arith.extui %16 : vector<256x8xi1> to vector<256x8xi32>
    %18 = arith.sitofp %17 : vector<256x8xi32> to vector<256x8xf32>
    %cst = arith.constant dense<0.000000e+00> : vector<8x8xf32>
    %19 = tpu.matmul %1, %18, %cst {dimension_numbers = #tpu.dot_dimension_numbers<[1], [0], [0], [1], [0, 0, 1, 1], [], []>, precision = #tpu.contract_precision<fp32>} : vector<8x256xf32>, vector<256x8xf32>, vector<8x8xf32> -> vector<8x8xf32>
    %20 = vector.extract_strided_slice %19 {offsets = [0, 0], sizes = [1, 8], strides = [1, 1]} : vector<8x8xf32> to vector<1x8xf32>
    %21 = vector.extract_strided_slice %19 {offsets = [1, 0], sizes = [1, 8], strides = [1, 1]} : vector<8x8xf32> to vector<1x8xf32>
    %22 = arith.mulf %20, %9 : vector<1x8xf32>
    %23 = arith.mulf %21, %9 : vector<1x8xf32>
    %c0_i32 = arith.constant 0 : i32
    %24 = vector.broadcast %c0_i32 : i32 to vector<1x8xi32>
    %25 = arith.cmpi eq, %7, %24 : vector<1x8xi32>
    %26 = arith.subf %23, %22 : vector<1x8xf32>
    %27 = arith.subf %22, %23 : vector<1x8xf32>
    %28 = arith.select %25, %26, %27 : vector<1x8xi1>, vector<1x8xf32>
    %cst_8 = arith.constant 0.000000e+00 : f32
    %29 = vector.broadcast %cst_8 : f32 to vector<1x8xf32>
    %30 = arith.maximumf %28, %29 : vector<1x8xf32>
    %31 = math.absf %28 : vector<1x8xf32>
    %cst_9 = arith.constant 0.000000e+00 : f32
    %32 = vector.broadcast %cst_9 : f32 to vector<1x8xf32>
    %33 = arith.subf %32, %31 : vector<1x8xf32>
    %34 = math.exp %33 : vector<1x8xf32>
    %cst_10 = arith.constant 1.000000e+00 : f32
    %35 = vector.broadcast %cst_10 : f32 to vector<1x8xf32>
    %36 = arith.addf %35, %34 : vector<1x8xf32>
    %37 = math.log %36 : vector<1x8xf32>
    %38 = arith.addf %30, %37 : vector<1x8xf32>
    %39 = vector.extract_strided_slice %19 {offsets = [4, 0], sizes = [1, 8], strides = [1, 1]} : vector<8x8xf32> to vector<1x8xf32>
    %40 = vector.extract_strided_slice %19 {offsets = [5, 0], sizes = [1, 8], strides = [1, 1]} : vector<8x8xf32> to vector<1x8xf32>
    %41 = arith.mulf %39, %9 : vector<1x8xf32>
    %42 = arith.mulf %40, %9 : vector<1x8xf32>
    %c0_i32_11 = arith.constant 0 : i32
    %43 = vector.broadcast %c0_i32_11 : i32 to vector<1x8xi32>
    %44 = arith.cmpi eq, %8, %43 : vector<1x8xi32>
    %45 = arith.subf %42, %41 : vector<1x8xf32>
    %46 = arith.subf %41, %42 : vector<1x8xf32>
    %47 = arith.select %44, %45, %46 : vector<1x8xi1>, vector<1x8xf32>
    %cst_12 = arith.constant 0.000000e+00 : f32
    %48 = vector.broadcast %cst_12 : f32 to vector<1x8xf32>
    %49 = arith.maximumf %47, %48 : vector<1x8xf32>
    %50 = math.absf %47 : vector<1x8xf32>
    %cst_13 = arith.constant 0.000000e+00 : f32
    %51 = vector.broadcast %cst_13 : f32 to vector<1x8xf32>
    %52 = arith.subf %51, %50 : vector<1x8xf32>
    %53 = math.exp %52 : vector<1x8xf32>
    %cst_14 = arith.constant 1.000000e+00 : f32
    %54 = vector.broadcast %cst_14 : f32 to vector<1x8xf32>
    %55 = arith.addf %54, %53 : vector<1x8xf32>
    %56 = math.log %55 : vector<1x8xf32>
    %57 = arith.addf %49, %56 : vector<1x8xf32>
    %c0_i32_15 = arith.constant 0 : i32
    %58 = vector.broadcast %c0_i32_15 : i32 to vector<1x8xi32>
    %59 = arith.cmpi ne, %7, %58 : vector<1x8xi32>
    %60 = arith.extui %59 : vector<1x8xi1> to vector<1x8xi32>
    %61 = arith.sitofp %60 : vector<1x8xi32> to vector<1x8xf32>
    %c0_i32_16 = arith.constant 0 : i32
    %62 = vector.broadcast %c0_i32_16 : i32 to vector<1x8xi32>
    %63 = arith.cmpi ne, %8, %62 : vector<1x8xi32>
    %64 = arith.extui %63 : vector<1x8xi1> to vector<1x8xi32>
    %65 = arith.sitofp %64 : vector<1x8xi32> to vector<1x8xf32>
    %66 = vector.extract_strided_slice %19 {offsets = [2, 0], sizes = [1, 8], strides = [1, 1]} : vector<8x8xf32> to vector<1x8xf32>
    %67 = arith.subf %66, %10 : vector<1x8xf32>
    %68 = math.absf %67 : vector<1x8xf32>
    %cst_17 = arith.constant 1.000000e+00 : f32
    %69 = vector.broadcast %cst_17 : f32 to vector<1x8xf32>
    %70 = arith.cmpf olt, %68, %69 : vector<1x8xf32>
    %cst_18 = arith.constant 5.000000e-01 : f32
    %71 = vector.broadcast %cst_18 : f32 to vector<1x8xf32>
    %72 = arith.mulf %71, %67 : vector<1x8xf32>
    %73 = arith.mulf %72, %67 : vector<1x8xf32>
    %cst_19 = arith.constant 5.000000e-01 : f32
    %74 = vector.broadcast %cst_19 : f32 to vector<1x8xf32>
    %75 = arith.subf %68, %74 : vector<1x8xf32>
    %76 = arith.select %70, %73, %75 : vector<1x8xi1>, vector<1x8xf32>
    %77 = vector.extract_strided_slice %19 {offsets = [3, 0], sizes = [1, 8], strides = [1, 1]} : vector<8x8xf32> to vector<1x8xf32>
    %78 = arith.subf %77, %11 : vector<1x8xf32>
    %79 = math.absf %78 : vector<1x8xf32>
    %cst_20 = arith.constant 1.000000e+00 : f32
    %80 = vector.broadcast %cst_20 : f32 to vector<1x8xf32>
    %81 = arith.cmpf olt, %79, %80 : vector<1x8xf32>
    %cst_21 = arith.constant 5.000000e-01 : f32
    %82 = vector.broadcast %cst_21 : f32 to vector<1x8xf32>
    %83 = arith.mulf %82, %78 : vector<1x8xf32>
    %84 = arith.mulf %83, %78 : vector<1x8xf32>
    %cst_22 = arith.constant 5.000000e-01 : f32
    %85 = vector.broadcast %cst_22 : f32 to vector<1x8xf32>
    %86 = arith.subf %79, %85 : vector<1x8xf32>
    %87 = arith.select %81, %84, %86 : vector<1x8xi1>, vector<1x8xf32>
    %88 = arith.addf %76, %87 : vector<1x8xf32>
    %89 = arith.mulf %61, %88 : vector<1x8xf32>
    %90 = vector.extract_strided_slice %19 {offsets = [6, 0], sizes = [1, 8], strides = [1, 1]} : vector<8x8xf32> to vector<1x8xf32>
    %91 = arith.subf %90, %12 : vector<1x8xf32>
    %92 = math.absf %91 : vector<1x8xf32>
    %cst_23 = arith.constant 1.000000e+00 : f32
    %93 = vector.broadcast %cst_23 : f32 to vector<1x8xf32>
    %94 = arith.cmpf olt, %92, %93 : vector<1x8xf32>
    %cst_24 = arith.constant 5.000000e-01 : f32
    %95 = vector.broadcast %cst_24 : f32 to vector<1x8xf32>
    %96 = arith.mulf %95, %91 : vector<1x8xf32>
    %97 = arith.mulf %96, %91 : vector<1x8xf32>
    %cst_25 = arith.constant 5.000000e-01 : f32
    %98 = vector.broadcast %cst_25 : f32 to vector<1x8xf32>
    %99 = arith.subf %92, %98 : vector<1x8xf32>
    %100 = arith.select %94, %97, %99 : vector<1x8xi1>, vector<1x8xf32>
    %101 = vector.extract_strided_slice %19 {offsets = [7, 0], sizes = [1, 8], strides = [1, 1]} : vector<8x8xf32> to vector<1x8xf32>
    %102 = arith.subf %101, %13 : vector<1x8xf32>
    %103 = math.absf %102 : vector<1x8xf32>
    %cst_26 = arith.constant 1.000000e+00 : f32
    %104 = vector.broadcast %cst_26 : f32 to vector<1x8xf32>
    %105 = arith.cmpf olt, %103, %104 : vector<1x8xf32>
    %cst_27 = arith.constant 5.000000e-01 : f32
    %106 = vector.broadcast %cst_27 : f32 to vector<1x8xf32>
    %107 = arith.mulf %106, %102 : vector<1x8xf32>
    %108 = arith.mulf %107, %102 : vector<1x8xf32>
    %cst_28 = arith.constant 5.000000e-01 : f32
    %109 = vector.broadcast %cst_28 : f32 to vector<1x8xf32>
    %110 = arith.subf %103, %109 : vector<1x8xf32>
    %111 = arith.select %105, %108, %110 : vector<1x8xi1>, vector<1x8xf32>
    %112 = arith.addf %100, %111 : vector<1x8xf32>
    %113 = arith.mulf %65, %112 : vector<1x8xf32>
    %cst_29 = arith.constant 0.000000e+00 : f32
    %114 = vector.broadcast %cst_29 : f32 to vector<1x8xf32>
    %115 = tpu.concatenate %38, %57, %89, %113, %61, %65, %114, %114 in 0 : vector<1x8xf32>, vector<1x8xf32>, vector<1x8xf32>, vector<1x8xf32>, vector<1x8xf32>, vector<1x8xf32>, vector<1x8xf32>, vector<1x8xf32> -> vector<8x8xf32>
    %cst_30 = arith.constant dense<0.000000e+00> : vector<8xf32>
    %116 = vector.multi_reduction <add>, %115, %cst_30 [1] : vector<8x8xf32> to vector<8xf32>
    %117 = vector.shape_cast %116 : vector<8xf32> to vector<8x1xf32>
    %c0_31 = arith.constant 0 : index
    %c0_32 = arith.constant 0 : index
    %c0_33 = arith.constant 0 : index
    %118 = vector.load %arg4[%c0_31, %c0_32, %c0_33] : memref<1x8x1xf32, #tpu.memory_space<vmem>>, vector<1x8x1xf32>
    %119 = vector.shape_cast %118 : vector<1x8x1xf32> to vector<8x1xf32>
    %120 = vector.shape_cast %117 : vector<8x1xf32> to vector<1x8x1xf32>
    tpu.vector_store %arg4[%c0_31, %c0_32, %c0_33], %120 {strides = array<i32>} : memref<1x8x1xf32, #tpu.memory_space<vmem>>, vector<1x8x1xf32>,
    return
  }
  func.func @transform_0(%arg0: i32) -> (i32, i32, i32) {
    %c0_i32 = arith.constant 0 : i32
    %c0_i32_0 = arith.constant 0 : i32
    %c0_i32_1 = arith.constant 0 : i32
    return %arg0, %c0_i32, %c0_i32_0 : i32, i32, i32
  }
  func.func @transform_1(%arg0: i32) -> (i32, i32, i32) {
    %c0_i32 = arith.constant 0 : i32
    %c0_i32_0 = arith.constant 0 : i32
    %c0_i32_1 = arith.constant 0 : i32
    return %arg0, %c0_i32, %c0_i32_0 : i32, i32, i32
  }
  func.func @transform_2(%arg0: i32) -> (i32, i32, i32) {
    %c0_i32 = arith.constant 0 : i32
    %c0_i32_0 = arith.constant 0 : i32
    %c0_i32_1 = arith.constant 0 : i32
    return %arg0, %c0_i32, %c0_i32_0 : i32, i32, i32
  }
  func.func @transform_3(%arg0: i32) -> (i32, i32, i32) {
    %c0_i32 = arith.constant 0 : i32
    %c0_i32_0 = arith.constant 0 : i32
    %c0_i32_1 = arith.constant 0 : i32
    return %arg0, %c0_i32, %c0_i32_0 : i32, i32, i32
  }
}

</mosaic_0001>

<bundles_post_ra>
// kernel: bin_rot_loss_pallas.1
= control target key start
LH: loop header
LB: loop body
LE: loop exit
PB: predicated region body
PF: predicated region fallthrough
CT: control target
= control target key end

     0   :  { %8 = vsyncpa [#allocation3], 0  ;;  %s3235_s0 = inlined_call_operand.hbm [shape: f32[2,8,256], index: 0, kind: input, shape index: {}]   ;;  %s3236_s1 = inlined_call_operand.hbm [shape: s32[2,3,8], index: 1, kind: input, shape index: {}]   ;;  %s3237_s2 = inlined_call_operand.hbm [shape: f32[2,5,8], index: 2, kind: input, shape index: {}]   ;;  %s3238_s3 = inlined_call_operand.hbm [shape: f32[2,8,1], index: 3, kind: output, shape index: {}]  }
   0x1   :  { %10 = vsyncpa [#allocation3 + $0x1], 0 }
   0x2   :  { %11 = vsyncpa [#allocation6], 0 }
   0x3   :  { %13 = vsyncpa [#allocation6 + $0x1], 0 }
   0x4   :  { %14 = vsyncpa [#allocation4], 0 }
   0x5   :  { %16 = vsyncpa [#allocation4 + $0x1], 0  ;;  %s2318_s12 = smov 0   ;;  %s2320_s13 = smov 0  }
   0x6   :  { %s2322_s14 = smov 0   ;;  %s2324_s15 = smov 0  }
   0x7 LB: > { %s2339_s16 = sadd.s32 4294967295, %s2290_s15   ;;  %s1511_s17 = sadd.s32 4294967294, %s2290_s15   ;;  %s2290_s15 = sphi %s2324_s15, %s3400_s15   ;;  %s2286_s14 = sphi %s2322_s14, %s3399_s14   ;;  %s2282_s13 = sphi %s2320_s13, %s3398_s13   ;;  %s2278_s12 = sphi %s2318_s12, %s3397_s12  }
   0x8   : > { %s2343_s18 = sadd.s32 1, %s2290_s15   ;;  %s29_s19 = sadd.s32 1, %s2286_s14 }
   0x9   : > { %s26_s20 = ssub.s32 %s2290_s15, %s2343_s18  ;;  %p36_p0 = scmp.ne.s32.totalorder %s2286_s14, %s2282_s13 }
   0xa   : > { %p27_p1 = scmp.eq.s32.totalorder %s26_s20, 0  ;;  %p37_p2 = scmp.eq.s32.totalorder %s2290_s15, 0 }
   0xb   : > { %p42_p3 = scmp.ne.s32.totalorder %s2282_s13, %s2278_s12  ;;  %p43_p4 = scmp.eq.s32.totalorder %s2339_s16, 0 }
   0xc   : > { %s2355_s21 = scalar_select %p27_p1, %s2286_s14, %s29_s19  }
   0xd   : > { %p38_p5 = por %p37_p2, %p36_p0  ;;  %p2357_p6 = por %p43_p4, %p42_p3 }
   0xe   : > { %p118_p7 = scmp.eq.s32.totalorder %s2339_s16, 1  ;;  %p124_p8 = scmp.eq.s32.totalorder %s1511_s17, 1 }
   0xf   : > { %s3298_s22 = scalar_select %p2357_p6, 1, 0 }
  0x10   : > { %p2086_p10 = scmp.lt.s32.totalorder %s2290_s15, 2  ;;  %p2364_p11 = por %p118_p7, %p36_p0 }
  0x11   : > { %p2368_p12 = por %p124_p8, %p42_p3  ;;  %s2373_s25 = sand.u32 1, %s2286_s14  }
  0x12   : > { %s3299_s23 = scalar_select %p2364_p11, 1, 0 }
  0x13   : > { %s3300_s24 = scalar_select %p2368_p12, 1, 0 }
  0x14   : > { %p2375_p13 = pnand %p2086_p10, %p38_p5  ;;  %s163_s27 = sand.u32 1, %s2290_s15  }
  0x15   : > { %s1517_s28 = sshll.u32 %s2373_s25, 2  ;;  %s1518_s29 = sshll.u32 %s2290_s15, 6 }
  0x16   : > { %s3301_s26 = scalar_select %p2375_p13, 1, 0 }
  0x17   : > { %s2385_s5 = scalar_lea.hbm %s3236_s1, %s1518_s29  ;;  %s167_s6 = scalar_lea.vmem [#allocation5], %s1517_s28 }
  0x18   : > { %s174_s7 = sshll.u32 %s167_s6, 4  ;;  %s2390_s8 = scalar_lea.sflag [#allocation6], %s163_s27  ;;  %s2387_s7 = int_to_ptr.vmem [resolvable:$true] %s174_s7 }
  0x19   : > { %s2130_s9 = scalar_lea.hbm %s2385_s5, 64  ;;  %p2396_p2 = pneg %p2375_p13 }
  0x1a   : > { %p2131_p1 = scmp.ne.s32.totalorder %s2385_s5, %s2130_s9  ;;  %s2135_s19 = scalar_lea.hbm %s3236_s1, 128 }
  0x1b   : > { %p2136_p5 = scmp.lt.u32.totalorder %s2385_s5, %s3236_s1  ;;  %p2137_p7 = scmp.lt.u32.totalorder %s2135_s19, %s2130_s9 }
  0x1c   : > { %p2133_p3 = pnand %p2396_p2, %p2131_p1  ;;  %p2139_p10 = scmp.lt.u32.totalorder %s2130_s9, %s2385_s5 }
  0x1d   : > { %p2138_p8 = por %p2137_p7, %p2136_p5 }
  0x1e   : > { %p2134_p4 = pneg %p2133_p3 }
  0x1f   : > { %p2140_p9 = por %p2139_p10, %p2138_p8 }
  0x21   : > { %p2141_p0 = pnand %p2140_p9, %p2134_p4 }
  0x23   : > { %2144 = shalt.err (!%p2141_p0)
}
  0x24   : > { %s2145_s27 = scalar_lea.vmem %s2387_s7, 64  ;;  %s2292_s29 = smov [#allocation5]  }
  0x25   : > { %p2146_p1 = scmp.ne.s32.totalorder %s2387_s7, %s2145_s27  ;;  %s2150_s30 = sshll.u32 %s2292_s29, 4  ;;  %s2151_s30 = int_to_ptr.vmem [resolvable:$false] %s2150_s30 }
  0x26   : > { %s2152_s4 = scalar_lea.vmem %s2151_s30, 128  ;;  %p2153_p11 = scmp.lt.s32.totalorder %s2387_s7, %s2151_s30 }
  0x27   : > { %p2148_p3 = pnand %p2146_p1, %p2396_p2  ;;  %p2154_p6 = scmp.lt.s32.totalorder %s2152_s4, %s2145_s27 }
  0x29   : > { %p2149_p12 = pneg %p2148_p3  ;;  %p2155_p5 = por %p2154_p6, %p2153_p11 }
  0x2b   : > { %p2156_p7 = pnand %p2155_p5, %p2149_p12 }
  0x2d   : > { %2159 = shalt.err (!%p2156_p7)
}
  0x2e   : > { %2078 = dma.hbm_to_vmem [thread:$0]  (!%p2375_p13), %s2385_s5, 64, %s2387_s7, %s2390_s8  }
  0x2f   : > { %p197_p9 = scmp.lt.s32.totalorder %s2290_s15, 3  ;;  %s1514_s6 = sshll.u32 %s2373_s25, 4 }
  0x30   : > { %s1661_s9 = sshll.u32 %s2290_s15, 8  ;;  %p3303_p0 = scmp.ge.s32.totalorder %s2290_s15, 1 }
  0x31   : > { %s2432_s20 = scalar_lea.hbm %s3235_s0, %s1661_s9  ;;  %s148_s28 = scalar_lea.vmem [#allocation2], %s1514_s6 }
  0x32   : > { %p2425_p6 = pnand %p3303_p0, %p197_p9  ;;  %s156_s27 = sshll.u32 %s148_s28, 4  ;;  %s2434_s27 = int_to_ptr.vmem [resolvable:$true] %s156_s27 }
  0x33   : > { %s1519_s5 = sshll.u32 %s2373_s25, 3  ;;  %s145_s7 = scalar_lea.sflag [#allocation3], %s2373_s25 }
  0x34   : > { %s3304_s11 = scalar_select %p2425_p6, 1, 0 }
  0x35   : > { %s2160_s29 = scalar_lea.hbm %s2432_s20, 256  ;;  %s2165_s9 = scalar_lea.hbm %s3235_s0, 512 }
  0x36   : > { %p2161_p11 = scmp.ne.s32.totalorder %s2432_s20, %s2160_s29  ;;  %p2166_p8 = scmp.lt.u32.totalorder %s2432_s20, %s3235_s0 }
  0x37   : > { %p2167_p10 = scmp.lt.u32.totalorder %s2165_s9, %s2160_s29  ;;  %p2169_p3 = scmp.lt.u32.totalorder %s2160_s29, %s2432_s20 }
  0x38   : > { %p2163_p12 = pnand %p2161_p11, %p2396_p2 }
  0x39   : > { %p2168_p1 = por %p2167_p10, %p2166_p8 }
  0x3a   : > { %p2164_p4 = pneg %p2163_p12 }
  0x3b   : > { %p2170_p5 = por %p2169_p3, %p2168_p1 }
  0x3d   : > { %p2171_p7 = pnand %p2170_p5, %p2164_p4 }
  0x3f   : > { %2174 = shalt.err (!%p2171_p7)
}
  0x40   : > { %s2175_s6 = scalar_lea.vmem %s2434_s27, 256  ;;  %s2293_s28 = smov [#allocation2]  }
  0x41   : > { %p2176_p9 = scmp.ne.s32.totalorder %s2434_s27, %s2175_s6  ;;  %s2180_s30 = sshll.u32 %s2293_s28, 4  ;;  %s2181_s30 = int_to_ptr.vmem [resolvable:$false] %s2180_s30 }
  0x42   : > { %s2182_s4 = scalar_lea.vmem %s2181_s30, 512  ;;  %p2183_p12 = scmp.lt.s32.totalorder %s2434_s27, %s2181_s30 }
  0x43   : > { %p2178_p0 = pnand %p2176_p9, %p2396_p2  ;;  %p2184_p6 = scmp.lt.s32.totalorder %s2182_s4, %s2175_s6 }
  0x45   : > { %p2179_p11 = pneg %p2178_p0  ;;  %p2185_p8 = por %p2184_p6, %p2183_p12 }
  0x47   : > { %p2186_p10 = pnand %p2185_p8, %p2179_p11 }
  0x49   : > { %2189 = shalt.err (!%p2186_p10)
}
  0x4a   : > { %2075 = dma.hbm_to_vmem [thread:$0]  (!%p2375_p13), %s2432_s20, 256, %s2434_s27, %s145_s7  }
  0x4b   : > { %s1520_s29 = sshll.u32 %s2290_s15, 7  ;;  %s185_s6 = scalar_lea.vmem [#allocation7], %s1519_s5 }
  0x4c   : > { %s2463_s19 = scalar_lea.hbm %s3237_s2, %s1520_s29  ;;  %s192_s28 = sshll.u32 %s185_s6, 4  ;;  %s193_s28 = int_to_ptr.vmem [resolvable:$true] %s192_s28 }
  0x4d   : > { %s2190_s30 = scalar_lea.hbm %s2463_s19, 128  ;;  %s2195_s7 = scalar_lea.hbm %s3237_s2, 256 }
  0x4e   : > { %p2191_p6 = scmp.ne.s32.totalorder %s2463_s19, %s2190_s30  ;;  %p2196_p3 = scmp.lt.u32.totalorder %s2463_s19, %s3237_s2 }
  0x4f   : > { %p2197_p5 = scmp.lt.u32.totalorder %s2195_s7, %s2190_s30  ;;  %p2199_p9 = scmp.lt.u32.totalorder %s2190_s30, %s2463_s19 }
  0x50   : > { %p2193_p4 = pnand %p2191_p6, %p2396_p2 }
  0x51   : > { %p2198_p7 = por %p2197_p5, %p2196_p3 }
  0x52   : > { %p2194_p1 = pneg %p2193_p4 }
  0x53   : > { %p2200_p0 = por %p2199_p9, %p2198_p7 }
  0x55   : > { %p2201_p11 = pnand %p2200_p0, %p2194_p1 }
  0x57   : > { %2204 = shalt.err (!%p2201_p11)
}
  0x58   : > { %s2205_s25 = scalar_lea.vmem %s193_s28, 128  ;;  %s2294_s5 = smov [#allocation7]  }
  0x59   : > { %p2206_p12 = scmp.ne.s32.totalorder %s193_s28, %s2205_s25  ;;  %s2210_s9 = sshll.u32 %s2294_s5, 4  ;;  %s2211_s9 = int_to_ptr.vmem [resolvable:$false] %s2210_s9 }
  0x5a   : > { %s2212_s17 = scalar_lea.vmem %s2211_s9, 256  ;;  %p2213_p6 = scmp.lt.s32.totalorder %s193_s28, %s2211_s9 }
  0x5b   : > { %p2208_p8 = pnand %p2206_p12, %p2396_p2  ;;  %p2214_p4 = scmp.lt.s32.totalorder %s2212_s17, %s2205_s25 }
  0x5d   : > { %p2209_p10 = pneg %p2208_p8  ;;  %p2215_p13 = por %p2214_p4, %p2213_p6 }
  0x5f   : > { %p2216_p3 = pnand %p2215_p13, %p2209_p10 }
  0x61   : > { %2219 = shalt.err (!%p2216_p3)
}
  0x62   : > { %p3305_p5 = scmp.ne.s32.totalorder %s3301_s26, 0  ;;  %p3306_p1 = scmp.ne.s32.totalorder %s3304_s11, 0 }
  0x64   : > { %2081 = dma.hbm_to_vmem [thread:$0]  (!%p3305_p5), %s2463_s19, 128, %s193_s28, %s2390_s8  }
  0x65   : > { %201 = sbr.rel (%p3306_p1) target bundleno = 684 (0x2ac), region = 32 }
  0x6c   : > { %s2488_s10 = sand.u32 1, %s2282_s13   ;;  %p3307_p13 = scmp.ne.s32.totalorder %s3298_s22, 0 }
  0x6d   : > { %s1522_s6 = sshll.u32 %s2488_s10, 4  ;;  %s204_s30 = scalar_lea.sflag [#allocation3], %s2488_s10 }
  0x6e   : > { %s2492_s20 = scalar_lea.vmem [#allocation2], %s1522_s6 }
  0x6f   : > { %2265 = dma.done.wait (%p3307_p13), %s204_s30, 256  }
  0x70   : > { %2267 = vsyncadd (%p3307_p13), %s204_s30, 4294967040  ;;  %s212_s26 = sand.u32 1, %s2339_s16   ;;  %s1523_s8 = sshll.u32 %s2488_s10, 2 }
  0x71   : > { %s213_s11 = scalar_lea.sflag [#allocation6], %s212_s26  ;;  %s216_s19 = scalar_lea.vmem [#allocation5], %s1523_s8 }
  0x72   : > { %2269 = dma.done.wait (%p3307_p13), %s213_s11, 192  }
  0x73   : > { %2271 = vsyncadd (%p3307_p13), %s213_s11, 4294967104  ;;  %v262_v0 = vlaneseq  ;;  %v2517_v13 = vld [vmem:[%s216_s19] sm:$0x7]  ;;  %v3267_v26 = vmov 0.0   ;;  %v3269_v32 = vmov 1.0|1.0  }
  0x74   : > { %3308 = vst [vmem:[#allocation12_spill] sm:$0xff] %v2517_v13  ;;  %s1524_s22 = sshll.u32 %s2488_s10, 3  ;;  %s1658_s27 = sshll.u32 %s2339_s16, 7 }
  0x75   : > { %v2504_v1 = vshrl.u32 %v262_v0, 7  ;;  %s225_s28 = scalar_lea.vmem [#allocation7], %s1524_s22  ;;  %s257_s7 = scalar_lea.vmem [#allocation8], %s1524_s22 }
  0x76   : > { %s1398_s4 = sshll.u32 %s257_s7, 4  ;;  %s3191_s5 = scalar_lea.hbm %s3238_s3, %s1658_s27  ;;  %s3193_s4 = int_to_ptr.vmem [resolvable:$true] %s1398_s4 }
  0x77   : > { %v297_v2 = vsub.s32 0, %v2504_v1  ;;  %v279_v3 = vadd.s32 128, %v2504_v1  ;;  %v280_v4 = vadd.s32 136, %v2504_v1  ;;  %v264_v5 = vadd.s32 8, %v2504_v1  ;;  %s1385_s9 = scalar_lea.sflag [#allocation4], %s2488_s10  ;;  %s2220_s17 = scalar_lea.vmem %s3193_s4, 128 }
  0x78   : > { %v281_v6 = vadd.s32 144, %v2504_v1  ;;  %v282_v7 = vadd.s32 152, %v2504_v1  ;;  %v265_v8 = vadd.s32 16, %v2504_v1  ;;  %v266_v9 = vadd.s32 24, %v2504_v1  ;;  %p2221_p2 = scmp.ne.s32.totalorder %s3193_s4, %s2220_s17  ;;  %p3394_p7 = scmp.ne.s32.totalorder %s3299_s23, 0 }
  0x79   : > { %v283_v10 = vadd.s32 160, %v2504_v1  ;;  %v284_v11 = vadd.s32 168, %v2504_v1  ;;  %v267_v12 = vadd.s32 32, %v2504_v1  ;;  %v268_v14 = vadd.s32 40, %v2504_v1  ;;  %s2297_s16 = smov [#allocation8]  }
  0x7a   : > { %v2521_v15 = vadd.s32 176, %v2504_v1  ;;  %v2524_v16 = vadd.s32 184, %v2504_v1  ;;  %v2527_v17 = vadd.s32 48, %v2504_v1  ;;  %v2530_v18 = vrot.slane %v2517_v13, %v297_v2  ;;  %p2222_p9 = pnand %p2221_p2, %p3394_p7  ;;  %s2224_s6 = sshll.u32 %s2297_s16, 4  ;;  %s2225_s6 = int_to_ptr.vmem [resolvable:$false] %s2224_s6 }
  0x7b   : > { %v2533_v19 = vadd.s32 56, %v2504_v1  ;;  %v2536_v20 = vadd.s32 192, %v2504_v1  ;;  %v2539_v21 = vadd.s32 200, %v2504_v1  ;;  %v2542_v22 = vadd.s32 64, %v2504_v1  ;;  %s2226_s30 = scalar_lea.vmem %s2225_s6, 256  ;;  %p2227_p11 = scmp.lt.s32.totalorder %s3193_s4, %s2225_s6 }
  0x7c   : > { %v2545_v23 = vadd.s32 72, %v2504_v1  ;;  %v2548_v24 = vadd.s32 208, %v2504_v1  ;;  %v2551_v25 = vadd.s32 216, %v2504_v1  ;;  %vm315_vm0 = vcmp.eq.s32.totalorder %v279_v3, %v2530_v18  ;;  %p2223_p0 = pneg %p2222_p9  ;;  %p2228_p12 = scmp.lt.s32.totalorder %s2226_s30, %s2220_s17 }
  0x7d   : > { %vm316_vm1 = vcmp.eq.s32.totalorder %v280_v4, %v2530_v18  ;;  %vm299_vm2 = vcmp.eq.s32.totalorder %v2504_v1, %v2530_v18  ;;  %vm300_vm3 = vcmp.eq.s32.totalorder %v264_v5, %v2530_v18  ;;  %v1542_v27 = vsel %vm315_vm0, 1.0, %v3267_v26 }
  0x7e   : > { %v1543_v28 = vsel %vm316_vm1, 1.0, %v3267_v26  ;;  %vm2560_vm4 = vmpackc.low %vm316_vm1, %vm315_vm0  ;;  %v1526_v30 = vsel %vm299_vm2, 1.0, %v3267_v26  ;;  %v2566_v31 = vadd.s32 80, %v2504_v1  ;;  %v2571_v33 = vsub.f32 %v1542_v27, %v1542_v27  ;;  %p2229_p8 = por %p2228_p12, %p2227_p11 }
  0x7f   : > { %1873 = vmatprep.subr.msk.bf16.mxu0 %vm2560_vm4, %v3269_v32  ;;  %v2573_v34 = vsub.f32 %v1543_v28, %v1543_v28  ;;  %v1527_v35 = vsel %vm300_vm3, 1.0, %v3267_v26  ;;  %vm2576_vm5 = vmpackc.low %vm300_vm3, %vm299_vm2  ;;  %v2580_v37 = vsub.f32 %v1526_v30, %v1526_v30  ;;  %vm317_vm6 = vcmp.eq.s32.totalorder %v281_v6, %v2530_v18 }
  0x80   : > { %1875 = vmatpush3.bf16.msk.msra.mxu0 %vm2576_vm5, %v3269_v32  ;;  %vm318_vm7 = vcmp.eq.s32.totalorder %v282_v7, %v2530_v18  ;;  %vm301_vm8 = vcmp.eq.s32.totalorder %v265_v8, %v2530_v18  ;;  %vm302_vm9 = vcmp.eq.s32.totalorder %v266_v9, %v2530_v18  ;;  %v1544_v38 = vsel %vm317_vm6, 1.0, %v3267_v26  ;;  %p2230_p10 = pnand %p2229_p8, %p2223_p0 }
  0x81   : > { %v1545_v39 = vsel %vm318_vm7, 1.0, %v3267_v26  ;;  %vm2591_vm10 = vmpackc.low %vm318_vm7, %vm317_vm6  ;;  %v1528_v41 = vsel %vm301_vm8, 1.0, %v3267_v26  ;;  %v1529_v42 = vsel %vm302_vm9, 1.0, %v3267_v26  ;;  %v2597_v43 = vsub.f32 %v1527_v35, %v1527_v35 }
  0x82   : > { %1877 = vmatprep.subr.msk.bf16.mxu0 %vm2591_vm10, %v3269_v32  ;;  %v2602_v44 = vsub.f32 %v1544_v38, %v1544_v38  ;;  %v2604_v45 = vsub.f32 %v1545_v39, %v1545_v39  ;;  %vm2606_vm11 = vmpackc.low %vm302_vm9, %vm301_vm8  ;;  %v2610_v47 = vsub.f32 %v1528_v41, %v1528_v41  ;;  %vm319_vm12 = vcmp.eq.s32.totalorder %v283_v10, %v2530_v18 }
  0x83   : > { %vm320_vm13 = vcmp.eq.s32.totalorder %v284_v11, %v2530_v18  ;;  %vm303_vm14 = vcmp.eq.s32.totalorder %v267_v12, %v2530_v18  ;;  %vm304_vm15 = vcmp.eq.s32.totalorder %v268_v14, %v2530_v18  ;;  %v2619_v48 = vsub.f32 %v1529_v42, %v1529_v42 }
  0x84   : > { %1879 = vmatpush3.bf16.msk.msra.mxu0 %vm2606_vm11, %v3269_v32  ;;  %v1546_v49 = vsel %vm319_vm12, 1.0, %v3267_v26  ;;  %v1547_v50 = vsel %vm320_vm13, 1.0, %v3267_v26  ;;  %vm2623_vm0 = vmpackc.low %vm320_vm13, %vm319_vm12  ;;  %v1530_v52 = vsel %vm303_vm14, 1.0, %v3267_v26  ;;  %v1531_v55 = vsel %vm304_vm15, 1.0, %v3267_v26 }
  0x85   : > { %1881 = vmatprep.subr.msk.bf16.mxu0 %vm2623_vm0, %v3269_v32  ;;  %v2631_v53 = vsub.f32 %v1546_v49, %v1546_v49  ;;  %v2633_v54 = vsub.f32 %v1547_v50, %v1547_v50  ;;  %vm2636_vm1 = vmpackc.low %vm304_vm15, %vm303_vm14  ;;  %v2640_v57 = vsub.f32 %v1530_v52, %v1530_v52  ;;  %v3271_v58 = vand.u32 4294901760, %v2571_v33 }
  0x86   : > { %v3266_v59 = vand.u32 4294901760, %v2573_v34  ;;  %v3260_v60 = vand.u32 4294901760, %v2580_v37  ;;  %v3259_v61 = vand.u32 4294901760, %v2597_v43  ;;  %vm321_vm2 = vcmp.eq.s32.totalorder %v2521_v15, %v2530_v18 }
  0x87   : > { %vm322_vm3 = vcmp.eq.s32.totalorder %v2524_v16, %v2530_v18  ;;  %vm305_vm6 = vcmp.eq.s32.totalorder %v2527_v17, %v2530_v18  ;;  %vm306_vm7 = vcmp.eq.s32.totalorder %v2533_v19, %v2530_v18  ;;  %v623_v62 = vsub.f32 %v2571_v33, %v3271_v58 }
  0x88   : > { %1883 = vmatpush3.bf16.msk.msra.mxu0 %vm2636_vm1, %v3269_v32  ;;  %v630_v63 = vsub.f32 %v2573_v34, %v3266_v59  ;;  %v511_v0 = vsub.f32 %v2580_v37, %v3260_v60  ;;  %v518_v2 = vsub.f32 %v2597_v43, %v3259_v61  ;;  %vm2669_vm8 = vmpackc.low %vm322_vm3, %vm321_vm2  ;;  %v2673_v4 = vsub.f32 %v1531_v55, %v1531_v55 }
  0x89   : > { %v1548_v5 = vsel %vm321_vm2, 1.0, %v3267_v26  ;;  %v1549_v6 = vsel %vm322_vm3, 1.0, %v3267_v26  ;;  %1885 = vmatprep.subr.msk.bf16.mxu0 %vm2669_vm8, %v3269_v32  ;;  %v1532_v7 = vsel %vm305_vm6, 1.0, %v3267_v26  ;;  %vm2684_vm9 = vmpackc.low %vm306_vm7, %vm305_vm6  ;;  %v624_v9 = vand.u32 4294901760, %v623_v62 }
  0x8a   : > { %v631_v10 = vand.u32 4294901760, %v630_v63  ;;  %v512_v11 = vand.u32 4294901760, %v511_v0  ;;  %v519_v12 = vand.u32 4294901760, %v518_v2  ;;  %v2688_v14 = vsub.f32 %v1548_v5, %v1548_v5 }
  0x8b   : > { %v2690_v15 = vsub.f32 %v1549_v6, %v1549_v6  ;;  %v1533_v16 = vsel %vm306_vm7, 1.0, %v3267_v26  ;;  %v2696_v17 = vsub.f32 %v1532_v7, %v1532_v7  ;;  %v3257_v30 = vand.u32 4294901760, %v2602_v44 }
  0x8c   : > { %v1904_v27 = vpack.c.bf16 %v631_v10, %v624_v9  ;;  %v1906_v28 = vpack.c.bf16 %v519_v12, %v512_v11  ;;  %1887 = vmatpush3.bf16.msk.msra.mxu0 %vm2684_vm9, %v3269_v32  ;;  %v3255_v35 = vand.u32 4294901760, %v2604_v45  ;;  %v3250_v38 = vand.u32 4294901760, %v2610_v47 }
  0x8d   : > { %v3249_v39 = vand.u32 4294901760, %v2619_v48  ;;  %vm323_vm12 = vcmp.eq.s32.totalorder %v2536_v20, %v2530_v18  ;;  %vm324_vm13 = vcmp.eq.s32.totalorder %v2539_v21, %v2530_v18  ;;  %v2709_v19 = vsub.f32 %v1533_v16, %v1533_v16 }
  0x8e   : > { %1905 = vmatprep.subr.bf16.mxu1 %v1904_v27  ;;  %v637_v41 = vsub.f32 %v2602_v44, %v3257_v30  ;;  %v644_v42 = vsub.f32 %v2604_v45, %v3255_v35  ;;  %v1550_v49 = vsel %vm323_vm12, 1.0, %v3267_v26  ;;  %vm2718_vm14 = vmpackc.low %vm324_vm13, %vm323_vm12  ;;  %v525_v20 = vsub.f32 %v2610_v47, %v3250_v38 }
  0x8f   : > { %1907 = vmatpush3.bf16.msra.mxu1 %v1906_v28  ;;  %v532_v21 = vsub.f32 %v2619_v48, %v3249_v39  ;;  %v1551_v52 = vsel %vm324_vm13, 1.0, %v3267_v26  ;;  %1889 = vmatprep.subr.msk.bf16.mxu0 %vm2718_vm14, %v3269_v32  ;;  %v3248_v55 = vand.u32 4294901760, %v2631_v53  ;;  %v2733_v0 = vsub.f32 %v1550_v49, %v1550_v49 }
  0x90   : > { %v638_v62 = vand.u32 4294901760, %v637_v41  ;;  %v645_v63 = vand.u32 4294901760, %v644_v42  ;;  %vm307_vm15 = vcmp.eq.s32.totalorder %v2542_v22, %v2530_v18  ;;  %v526_v2 = vand.u32 4294901760, %v525_v20 }
  0x91   : > { %v533_v5 = vand.u32 4294901760, %v532_v21  ;;  %vm308_vm2 = vcmp.eq.s32.totalorder %v2545_v23, %v2530_v18  ;;  %v1534_v6 = vsel %vm307_vm15, 1.0, %v3267_v26  ;;  %v2740_v9 = vsub.f32 %v1551_v52, %v1551_v52 }
  0x92   : > { %v1908_v7 = vpack.c.bf16 %v645_v63, %v638_v62  ;;  %v1535_v10 = vsel %vm308_vm2, 1.0, %v3267_v26  ;;  %vm2743_vm3 = vmpackc.low %vm308_vm2, %vm307_vm15  ;;  %v651_v22 = vsub.f32 %v2631_v53, %v3248_v55  ;;  %v2753_v23 = vsub.f32 %v1534_v6, %v1534_v6 }
  0x93   : > { %v1910_v12 = vpack.c.bf16 %v533_v5, %v526_v2  ;;  %1891 = vmatpush3.bf16.msk.msra.mxu0 %vm2743_vm3, %v3269_v32  ;;  %v3246_v16 = vand.u32 4294901760, %v2633_v54  ;;  %v3243_v27 = vand.u32 4294901760, %v2640_v57  ;;  %v2757_v28 = vsub.f32 %v1535_v10, %v1535_v10 }
  0x94   : > { %1909 = vmatprep.subr.bf16.mxu1 %v1908_v7  ;;  %v3242_v41 = vand.u32 4294901760, %v2673_v4  ;;  %vm325_vm6 = vcmp.eq.s32.totalorder %v2548_v24, %v2530_v18  ;;  %vm326_vm7 = vcmp.eq.s32.totalorder %v2551_v25, %v2530_v18  ;;  %v652_v42 = vand.u32 4294901760, %v651_v22 }
  0x95   : > { %1911 = vmatpush3.bf16.msra.mxu1 %v1910_v12  ;;  %v658_v49 = vsub.f32 %v2633_v54, %v3246_v16  ;;  %v539_v20 = vsub.f32 %v2640_v57, %v3243_v27  ;;  %v1552_v21 = vsel %vm325_vm6, 1.0, %v3267_v26  ;;  %vm2771_vm12 = vmpackc.low %vm326_vm7, %vm325_vm6  ;;  %v1553_v25 = vsel %vm326_vm7, 1.0, %v3267_v26 }
  0x96   : > { %v546_v24 = vsub.f32 %v2673_v4, %v3242_v41  ;;  %1893 = vmatprep.subr.msk.bf16.mxu0 %vm2771_vm12, %v3269_v32  ;;  %v2782_v62 = vsub.f32 %v1552_v21, %v1552_v21  ;;  %v274_v63 = vadd.s32 88, %v2504_v1  ;;  %vm309_vm13 = vcmp.eq.s32.totalorder %v2566_v31, %v2530_v18 }
  0x97   : > { %v659_v2 = vand.u32 4294901760, %v658_v49  ;;  %v540_v5 = vand.u32 4294901760, %v539_v20  ;;  %v3244_v6 = vand.u32 4294901760, %v2688_v14  ;;  %v1536_v10 = vsel %vm309_vm13, 1.0, %v3267_v26 }
  0x98   : > { %v547_v7 = vand.u32 4294901760, %v546_v24  ;;  %vm310_vm15 = vcmp.eq.s32.totalorder %v274_v63, %v2530_v18  ;;  %v3245_v22 = vand.u32 4294901760, %v2690_v15  ;;  %v2791_v41 = vsub.f32 %v1553_v25, %v1553_v25 }
  0x99   : > { %v1912_v12 = vpack.c.bf16 %v659_v2, %v652_v42  ;;  %v1537_v21 = vsel %vm310_vm15, 1.0, %v3267_v26  ;;  %vm2794_vm2 = vmpackc.low %vm310_vm15, %vm309_vm13  ;;  %v3331_v49 = vmov 0  ;;  %v665_v31 = vsub.f32 %v2688_v14, %v3244_v6 }
  0x9a   : > { %v3332_v49 = vsel %vm2794_vm2, 4294967295, %v3331_v49  ;;  %v1914_v20 = vpack.c.bf16 %v547_v7, %v540_v5  ;;  %1895 = vmatpush3.bf16.msk.msra.mxu0 %vm2794_vm2, %v3269_v32  ;;  %v2804_v24 = vsub.f32 %v1536_v10, %v1536_v10  ;;  %v672_v42 = vsub.f32 %v2690_v15, %v3245_v22 }
  0x9b   : > { %3333 = vst [vmem:[#allocation13_spill] sm:$0xff] %v3332_v49  ;;  %v3247_v25 = vand.u32 4294901760, %v2696_v17  ;;  %1913 = vmatprep.subr.bf16.mxu1 %v1912_v12  ;;  %v666_v63 = vand.u32 4294901760, %v665_v31  ;;  %v3254_v2 = vand.u32 4294901760, %v2709_v19  ;;  %v291_v27 = vadd.s32 224, %v2504_v1 }
  0x9c   : > { %v292_v5 = vadd.s32 232, %v2504_v1  ;;  %1915 = vmatpush3.bf16.msra.mxu1 %v1914_v20  ;;  %v673_v7 = vand.u32 4294901760, %v672_v42  ;;  %v275_v6 = vadd.s32 96, %v2504_v1  ;;  %v276_v22 = vadd.s32 104, %v2504_v1 }
  0x9d   : > { %v553_v10 = vsub.f32 %v2696_v17, %v3247_v25  ;;  %v560_v12 = vsub.f32 %v2709_v19, %v3254_v2  ;;  %vm327_vm6 = vcmp.eq.s32.totalorder %v291_v27, %v2530_v18  ;;  %v3253_v31 = vand.u32 4294901760, %v2733_v0 }
  0x9e   : > { %vm328_vm7 = vcmp.eq.s32.totalorder %v292_v5, %v2530_v18  ;;  %v1916_v20 = vpack.c.bf16 %v673_v7, %v666_v63  ;;  %v1554_v16 = vsel %vm327_vm6, 1.0, %v3267_v26  ;;  %v3334_v55 = vmov 0 }
  0x9f   : > { %v554_v42 = vand.u32 4294901760, %v553_v10  ;;  %v1555_v25 = vsel %vm328_vm7, 1.0, %v3267_v26  ;;  %vm2826_vm13 = vmpackc.low %vm328_vm7, %vm327_vm6  ;;  %v2830_v39 = vsub.f32 %v1537_v21, %v1537_v21  ;;  %v561_v38 = vand.u32 4294901760, %v560_v12 }
  0xa0   : > { %v3335_v55 = vsel %vm2826_vm13, 4294967295, %v3334_v55  ;;  %1897 = vmatprep.subr.msk.bf16.mxu0 %vm2826_vm13, %v3269_v32  ;;  %v2835_v27 = vsub.f32 %v1554_v16, %v1554_v16  ;;  %vm311_vm15 = vcmp.eq.s32.totalorder %v275_v6, %v2530_v18  ;;  %1917 = vmatprep.subr.bf16.mxu1 %v1916_v20  ;;  %vm312_vm2 = vcmp.eq.s32.totalorder %v276_v22, %v2530_v18 }
  0xa1   : > { %3336 = vst [vmem:[#allocation14_spill] sm:$0xff] %v3335_v55  ;;  %v1538_v63 = vsel %vm311_vm15, 1.0, %v3267_v26  ;;  %v679_v5 = vsub.f32 %v2733_v0, %v3253_v31  ;;  %v3256_v21 = vand.u32 4294901760, %v2740_v9  ;;  %v1918_v7 = vpack.c.bf16 %v561_v38, %v554_v42  ;;  %vm2847_vm6 = vmpackc.low %vm312_vm2, %vm311_vm15 }
  0xa2   : > { %v2844_v10 = vsub.f32 %v1555_v25, %v1555_v25  ;;  %v1539_v12 = vsel %vm312_vm2, 1.0, %v3267_v26  ;;  %v3337_v16 = vmov 0  ;;  %v3258_v6 = vand.u32 4294901760, %v2753_v23  ;;  %1899 = vmatpush3.bf16.msk.msra.mxu0 %vm2847_vm6, %v3269_v32 }
  0xa3   : > { %v3338_v16 = vsel %vm2847_vm6, 4294967295, %v3337_v16  ;;  %v2855_v22 = vsub.f32 %v1538_v63, %v1538_v63  ;;  %v680_v20 = vand.u32 4294901760, %v679_v5  ;;  %v686_v38 = vsub.f32 %v2740_v9, %v3256_v21  ;;  %1919 = vmatpush3.bf16.msra.mxu1 %v1918_v7 }
  0xa4   : > { %3339 = vst [vmem:[#allocation15_spill] sm:$0xff] %v3338_v16  ;;  %v3263_v25 = vand.u32 4294901760, %v2757_v28  ;;  %v567_v42 = vsub.f32 %v2753_v23, %v3258_v6  ;;  %v293_v31 = vadd.s32 240, %v2504_v1  ;;  %v294_v2 = vadd.s32 248, %v2504_v1 }
  0xa5   : > { %v277_v35 = vadd.s32 112, %v2504_v1  ;;  %v687_v63 = vand.u32 4294901760, %v686_v38  ;;  %v278_v21 = vadd.s32 120, %v2504_v1  ;;  %v3268_v7 = vand.u32 4294901760, %v2782_v62 }
  0xa6   : > { %v574_v5 = vsub.f32 %v2757_v28, %v3263_v25  ;;  %v568_v30 = vand.u32 4294901760, %v567_v42  ;;  %vm329_vm2 = vcmp.eq.s32.totalorder %v293_v31, %v2530_v18  ;;  %vm330_vm7 = vcmp.eq.s32.totalorder %v294_v2, %v2530_v18  ;;  %v258_v42 = vld [vmem:[%s2492_s20] sm:$0xff] }
  0xa7   : > { %v1920_v6 = vpack.c.bf16 %v687_v63, %v680_v20  ;;  %v1556_v38 = vsel %vm329_vm2, 1.0, %v3267_v26  ;;  %v1557_v60 = vsel %vm330_vm7, 1.0, %v3267_v26  ;;  %vm2877_vm6 = vmpackc.low %vm330_vm7, %vm329_vm2  ;;  %v3340_v25 = vmov 0  ;;  %v259_v20 = vld [vmem:[%s2492_s20 + $0x8] sm:$0xff] }
  0xa8   : > { %v575_v61 = vand.u32 4294901760, %v574_v5  ;;  %v3341_v25 = vsel %vm2877_vm6, 4294967295, %v3340_v25  ;;  %v2881_v1 = vsub.f32 %v1539_v12, %v1539_v12  ;;  %1901 = vmatprep.subr.msk.bf16.mxu0 %vm2877_vm6, %v3269_v32  ;;  %v2886_v31 = vsub.f32 %v1556_v38, %v1556_v38 }
  0xa9   : > { %3342 = vst [vmem:[#allocation16_spill] sm:$0xff] %v3341_v25  ;;  %vm314_vm15 = vcmp.eq.s32.totalorder %v278_v21, %v2530_v18  ;;  %vm3343_vm13 = vcmp.eq.s32.totalorder %v277_v35, %v2530_v18  ;;  %1921 = vmatprep.subr.bf16.mxu1 %v1920_v6  ;;  %v2894_v5 = vsub.f32 %v1557_v60, %v1557_v60  ;;  %v3345_v59 = vmov 0 }
  0xaa   : > { %v1540_v2 = vsel %vm3343_vm13, 1.0, %v3267_v26  ;;  %v1922_v63 = vpack.c.bf16 %v575_v61, %v568_v30  ;;  %v1541_v12 = vsel %vm314_vm15, 1.0, %v3267_v26  ;;  %vm3344_vm2 = vmmov %vm3343_vm13  ;;  %v693_v21 = vsub.f32 %v2782_v62, %v3268_v7 }
  0xab   : > { %vm2899_vm7 = vmpackc.low %vm314_vm15, %vm3344_vm2  ;;  %v2909_v6 = vsub.f32 %v1540_v2, %v1540_v2  ;;  %v3274_v60 = vand.u32 4294901760, %v2791_v41  ;;  %v3277_v61 = vand.u32 4294901760, %v2804_v24  ;;  %v3280_v18 = vand.u32 4294901760, %v2830_v39 }
  0xac   : > { %v3346_v59 = vsel %vm2899_vm7, 4294967295, %v3345_v59  ;;  %1903 = vmatpush3.bf16.msk.msra.mxu0 %vm2899_vm7, %v3269_v32  ;;  %1923 = vmatpush3.bf16.msra.mxu1 %v1922_v63  ;;  %v2914_v30 = vsub.f32 %v1541_v12, %v1541_v12  ;;  %v2916_v35 = vand.u32 4294901760, %v259_v20  ;;  %v1936_v38 = vpack.c.bf16 %v2573_v34, %v2571_v33 }
  0xad   : > { %3347 = vst [vmem:[#allocation17_spill] sm:$0xff] %v3346_v59  ;;  %v2920_v26 = vand.u32 4294901760, %v258_v42  ;;  %v694_v7 = vand.u32 4294901760, %v693_v21  ;;  %v700_v2 = vsub.f32 %v2791_v41, %v3274_v60  ;;  %v581_v32 = vsub.f32 %v2804_v24, %v3277_v61 }
  0xae   : > { %3348 = vst [vmem:[#allocation18_spill] sm:$0xff] %v2916_v35  ;;  %v588_v63 = vsub.f32 %v2830_v39, %v3280_v18  ;;  %v2932_v12 = vsub.f32 %v259_v20, %v2916_v35  ;;  %1937 = vmatprep.subr.bf16.mxu0 %v1936_v38  ;;  %v3285_v21 = vand.u32 4294901760, %v2835_v27  ;;  %v3291_v13 = vand.u32 4294901760, %v2844_v10  ;;  %732 = vmatprep.mubr.f32.mxu1 %v2916_v35 }
  0xaf   : > { %v2935_v58 = vsub.f32 %v258_v42, %v2920_v26  ;;  %v701_v60 = vand.u32 4294901760, %v700_v2  ;;  %v582_v59 = vand.u32 4294901760, %v581_v32  ;;  %v3290_v25 = vand.u32 4294901760, %v2855_v22 }
  0xb0   : > { %v589_v61 = vand.u32 4294901760, %v588_v63  ;;  %v3292_v18 = vand.u32 4294901760, %v2932_v12  ;;  %v707_v42 = vsub.f32 %v2835_v27, %v3285_v21  ;;  %v714_v38 = vsub.f32 %v2844_v10, %v3291_v13 }
  0xb1   : > { %v3293_v20 = vand.u32 4294901760, %v2935_v58  ;;  %v1924_v16 = vpack.c.bf16 %v701_v60, %v694_v7  ;;  %v595_v32 = vsub.f32 %v2855_v22, %v3290_v25  ;;  %v3294_v2 = vand.u32 4294901760, %v2881_v1 }
  0xb2   : > { %v1926_v55 = vpack.c.bf16 %v589_v61, %v582_v59  ;;  %v494_v63 = vsub.f32 %v2932_v12, %v3292_v18  ;;  %v708_v35 = vand.u32 4294901760, %v707_v42  ;;  %v715_v49 = vand.u32 4294901760, %v714_v38 }
  0xb3   : > { %v500_v21 = vsub.f32 %v2935_v58, %v3293_v20  ;;  %1925 = vmatprep.subr.bf16.mxu1 %v1924_v16  ;;  %v1938_v59 = vpack.c.bf16 %v2597_v43, %v2580_v37  ;;  %v596_v7 = vand.u32 4294901760, %v595_v32  ;;  %v602_v60 = vsub.f32 %v2881_v1, %v3294_v2 }
  0xb4   : > { %v1940_v61 = vpack.c.bf16 %v2604_v45, %v2602_v44  ;;  %1927 = vmatpush3.bf16.msra.mxu1 %v1926_v55  ;;  %v495_v25 = vand.u32 4294901760, %v494_v63  ;;  %v1928_v18 = vpack.c.bf16 %v715_v49, %v708_v35  ;;  %v720_v20 = vand.u32 4294901760, %v2886_v31 }
  0xb5   : > { %v501_v13 = vand.u32 4294901760, %v500_v21  ;;  %v603_v42 = vand.u32 4294901760, %v602_v60  ;;  %v3297_v16 = vand.u32 4294901760, %v2894_v5  ;;  %v3295_v38 = vand.u32 4294901760, %v2909_v6 }
  0xb6   : > { %v3296_v32 = vand.u32 4294901760, %v2914_v30  ;;  %496 = vmatprep.mubr.f32.mxu0 %v495_v25  ;;  %1929 = vmatprep.subr.bf16.mxu1 %v1928_v18  ;;  %v721_v2 = vsub.f32 %v2886_v31, %v720_v20  ;;  %v1942_v25 = vpack.c.bf16 %v2619_v48, %v2610_v47  ;;  %v1944_v60 = vpack.c.bf16 %v2633_v54, %v2631_v53 }
  0xb7   : > { %502 = vmatmul.mubr.f32.vlgmr.msra.gmra.mrb[0].mxu0 %v501_v13  ;;  %v1930_v55 = vpack.c.bf16 %v603_v42, %v596_v7  ;;  %v728_v49 = vsub.f32 %v2894_v5, %v3297_v16  ;;  %v609_v35 = vsub.f32 %v2909_v6, %v3295_v38  ;;  %v3356_v16 = vand.u32 4294901760, %v2619_v48 }
  0xb8   : > { %v616_v21 = vsub.f32 %v2914_v30, %v3296_v32  ;;  %1939 = vmatpush3.bf16.msra.mxu0 %v1938_v59  ;;  %v722_v18 = vand.u32 4294901760, %v721_v2  ;;  %869 = vmatprep.mubr.f32.mxu0 %v2932_v12  ;;  %v1946_v32 = vpack.c.bf16 %v2673_v4, %v2640_v57  ;;  %v1948_v59 = vpack.c.bf16 %v2690_v15, %v2688_v14 }
  0xb9   : > { %1931 = vmatpush3.bf16.msra.mxu1 %v1930_v55  ;;  %1941 = vmatprep.subr.bf16.mxu0 %v1940_v61  ;;  %v729_v13 = vand.u32 4294901760, %v728_v49  ;;  %v610_v63 = vand.u32 4294901760, %v609_v35  ;;  %v3349_v2 = vand.u32 4294901760, %v2571_v33  ;;  %v3350_v55 = vand.u32 4294901760, %v2573_v34 }
  0xba   : > { %v617_v7 = vand.u32 4294901760, %v616_v21  ;;  %v3351_v49 = vand.u32 4294901760, %v2580_v37  ;;  %v3352_v35 = vand.u32 4294901760, %v2597_v43  ;;  %v3357_v33 = vand.u32 4294901760, %v2631_v53 }
  0xbb   : > { %v1932_v42 = vpack.c.bf16 %v729_v13, %v722_v18  ;;  %v2000_v61 = vpack.c.bf16 %v3350_v55, %v3349_v2  ;;  %v3353_v18 = vand.u32 4294901760, %v2602_v44  ;;  %v3354_v13 = vand.u32 4294901760, %v2604_v45 }
  0xbc   : > { %v1934_v38 = vpack.c.bf16 %v617_v7, %v610_v63  ;;  %1943 = vmatpush3.bf16.msra.mxu0 %v1942_v25  ;;  %v2002_v21 = vpack.c.bf16 %v3352_v35, %v3351_v49  ;;  %v3355_v7 = vand.u32 4294901760, %v2610_v47  ;;  %v3358_v34 = vand.u32 4294901760, %v2633_v54 }
  0xbd   : > { %v2004_v63 = vpack.c.bf16 %v3354_v13, %v3353_v18  ;;  %1933 = vmatprep.subr.bf16.mxu1 %v1932_v42  ;;  %1945 = vmatprep.subr.bf16.mxu0 %v1944_v60  ;;  %v3359_v43 = vand.u32 4294901760, %v2640_v57  ;;  %v3360_v2 = vand.u32 4294901760, %v2673_v4  ;;  %v3361_v45 = vand.u32 4294901760, %v2688_v14  ;;  %v3375_v18 = vld [vmem:[#allocation18_spill] sm:$0xff]  ;;  %v3376_v13 = vld [vmem:[#allocation15_spill] sm:$0xff] }
  0xbe   : > { %v2006_v25 = vpack.c.bf16 %v3356_v16, %v3355_v7  ;;  %v2008_v37 = vpack.c.bf16 %v3358_v34, %v3357_v33  ;;  %v3362_v55 = vand.u32 4294901760, %v2690_v15  ;;  %1935 = vmatpush3.bf16.msra.mxu1 %v1934_v38  ;;  %v3363_v48 = vand.u32 4294901760, %v2696_v17 }
  0xbf   : > { %v2010_v44 = vpack.c.bf16 %v3360_v2, %v3359_v43  ;;  %v3364_v16 = vand.u32 4294901760, %v2709_v19  ;;  %v3365_v53 = vand.u32 4294901760, %v2733_v0  ;;  %v3366_v54 = vand.u32 4294901760, %v2740_v9 }
  0xc0   : > { %v2012_v47 = vpack.c.bf16 %v3362_v55, %v3361_v45  ;;  %v3367_v57 = vand.u32 4294901760, %v2753_v23  ;;  %v3368_v4 = vand.u32 4294901760, %v2757_v28  ;;  %v3369_v14 = vmov 1.0|1.0   ;;  %1947 = vmatpush3.bf16.msra.mxu0 %v1946_v32  ;;  %v3371_v32 = vld [vmem:[#allocation13_spill] sm:$0xff] }
  0xc1   : > { %v2014_v60 = vpack.c.bf16 %v3364_v16, %v3363_v48  ;;  %v2016_v42 = vpack.c.bf16 %v3366_v54, %v3365_v53  ;;  %1969 = vmatprep.subr.msk.bf16.mxu1 %vm2560_vm4, %v3369_v14  ;;  %v1950_v15 = vpack.c.bf16 %v2709_v19, %v2696_v17  ;;  %734 = vmatmul.mubr.f32.vlgmr.msra.gmra.mrb[0].mxu1 %v2920_v26  ;;  %v3370_v35 = vand.u32 4294901760, %v2932_v12 }
  0xc2   : > { %v2018_v49 = vpack.c.bf16 %v3368_v4, %v3367_v57  ;;  %1949 = vmatprep.subr.bf16.mxu0 %v1948_v59  ;;  %v1952_v38 = vpack.c.bf16 %v2740_v9, %v2733_v0  ;;  %1971 = vmatpush3.bf16.msk.msra.mxu1 %vm2576_vm5, %v3369_v14  ;;  %v1954_v17 = vpack.c.bf16 %v2757_v28, %v2753_v23  ;;  %v3373_v59 = vld [vmem:[#allocation14_spill] sm:$0xff]  ;;  %v3381_v29 = vand.u32 4294901760, %v2782_v62 }
  0xc3   : > { %976 = vmatprep.mubr.f32.mxu1 %v3370_v35  ;;  %1973 = vmatprep.subr.msk.bf16.mxu1 %vm2591_vm10, %v3369_v14  ;;  %v1956_v19 = vpack.c.bf16 %v2791_v41, %v2782_v62  ;;  %v1958_v0 = vpack.c.bf16 %v2830_v39, %v2804_v24  ;;  %v1960_v9 = vpack.c.bf16 %v2844_v10, %v2835_v27  ;;  %v3383_v36 = vand.u32 4294901760, %v2804_v24 }
  0xc4   : > { %1951 = vmatpush3.bf16.msra.mxu0 %v1950_v15  ;;  %v1962_v23 = vpack.c.bf16 %v2881_v1, %v2855_v22  ;;  %v1964_v28 = vpack.c.bf16 %v2894_v5, %v2886_v31  ;;  %v1966_v12 = vpack.c.bf16 %v2914_v30, %v2909_v6  ;;  %vm3372_vm13 = vnez %v3371_v32 }
  0xc5   : > { %1953 = vmatprep.subr.bf16.mxu0 %v1952_v38  ;;  %vm3374_vm15 = vnez %v3373_v59  ;;  %vm3377_vm2 = vnez %v3376_v13  ;;  %v3384_v40 = vand.u32 4294901760, %v2830_v39  ;;  %v3385_v62 = vand.u32 4294901760, %v2835_v27 }
  0xc6   : > { %1975 = vmatpush3.bf16.msk.msra.mxu1 %vm2606_vm11, %v3369_v14  ;;  %v3387_v46 = vand.u32 4294901760, %v2855_v22  ;;  %v3388_v51 = vand.u32 4294901760, %v2881_v1  ;;  %v3389_v24 = vand.u32 4294901760, %v2894_v5  ;;  %v3390_v56 = vand.u32 4294901760, %v2909_v6 }
  0xc7   : > { %1977 = vmatprep.subr.msk.bf16.mxu1 %vm2623_vm0, %v3369_v14  ;;  %v3391_v3 = vand.u32 4294901760, %v2914_v30 }
  0xc8   : > { %1955 = vmatpush3.bf16.msra.mxu0 %v1954_v17  ;;  %v2026_v39 = vpack.c.bf16 %v3388_v51, %v3387_v46  ;;  %v2028_v27 = vpack.c.bf16 %v3389_v24, %v720_v20 }
  0xc9   : > { %1957 = vmatprep.subr.bf16.mxu0 %v1956_v19 }
  0xca   : > { %1979 = vmatpush3.bf16.msk.msra.mxu1 %vm2636_vm1, %v3369_v14 }
  0xcb   : > { %1981 = vmatprep.subr.msk.bf16.mxu1 %vm2669_vm8, %v3369_v14 }
  0xcc   : > { %1959 = vmatpush3.bf16.msra.mxu0 %v1958_v0 }
  0xcd   : > { %1961 = vmatprep.subr.bf16.mxu0 %v1960_v9 }
  0xce   : > { %1983 = vmatpush3.bf16.msk.msra.mxu1 %vm2684_vm9, %v3369_v14 }
  0xcf   : > { %1985 = vmatprep.subr.msk.bf16.mxu1 %vm2718_vm14, %v3369_v14 }
  0xd0   : > { %1963 = vmatpush3.bf16.msra.mxu0 %v1962_v23 }
  0xd1   : > { %1965 = vmatprep.subr.bf16.mxu0 %v1964_v28  ;;  %v3392_v28 = vld [vmem:[#allocation12_spill] sm:$0xff] }
  0xd2   : > { %1987 = vmatpush3.bf16.msk.msra.mxu1 %vm2743_vm3, %v3369_v14 }
  0xd3   : > { %1989 = vmatprep.subr.msk.bf16.mxu1 %vm2771_vm12, %v3369_v14 }
  0xd4   : > { %1967 = vmatpush3.bf16.msra.mxu0 %v1966_v12 }
  0xd5   : > { %2001 = vmatprep.subr.bf16.mxu0 %v2000_v61 }
  0xd6   : > { %1991 = vmatpush3.bf16.msk.msra.mxu1 %vm3372_vm13, %v3369_v14 }
  0xd7   : > { %872 = vmatmul.mubr.f32.vlgmr.msra.gmra.mrb[2].mxu0 %v2935_v58  ;;  %1993 = vmatprep.subr.msk.bf16.mxu1 %vm3374_vm15, %v3369_v14 }
  0xd8   : > { %2003 = vmatpush3.bf16.msra.mxu0 %v2002_v21  ;;  %1146 = vmatprep.mubr.f32.mxu0 %v3375_v18  ;;  %v3380_v21 = vand.u32 4294901760, %v2935_v58  ;;  %v2022_v58 = vpack.c.bf16 %v3384_v40, %v3383_v36 }
  0xd9   : > { %2005 = vmatprep.subr.bf16.mxu0 %v2004_v63  ;;  %v3382_v63 = vand.u32 4294901760, %v2791_v41  ;;  %v3386_v41 = vand.u32 4294901760, %v2844_v10  ;;  %v2030_v10 = vpack.c.bf16 %v3391_v3, %v3390_v56 }
  0xda   : > { %1995 = vmatpush3.bf16.msk.msra.mxu1 %vm3377_vm2, %v3369_v14 }
  0xdb   : > { %1997 = vmatprep.subr.msk.bf16.mxu1 %vm2877_vm6, %v3369_v14  ;;  %v2024_v33 = vpack.c.bf16 %v3386_v41, %v3385_v62 }
  0xdc   : > { %2007 = vmatpush3.bf16.msra.mxu0 %v2006_v25  ;;  %v2020_v25 = vpack.c.bf16 %v3382_v63, %v3381_v29 }
  0xdd   : > { %2009 = vmatprep.subr.bf16.mxu0 %v2008_v37 }
  0xde   : > { %1999 = vmatpush3.bf16.msk.msra.mxu1 %vm2899_vm7, %v3369_v14 }
  0xdf   : > { %2033 = vmatprep.subr.msk.bf16.mxu1 %vm2560_vm4, %v3369_v14  ;;  %vm1262_vm4 = vcmp.eq.s32.totalorder %v3392_v28, 0 }
  0xe0   : > { %2011 = vmatpush3.bf16.msra.mxu0 %v2010_v44 }
  0xe1   : > { %980 = vmatmul.mubr.f32.vlgmr.msra.gmra.mrb[2].mxu1 %v3380_v21  ;;  %2013 = vmatprep.subr.bf16.mxu0 %v2012_v47  ;;  %v261_v47 = vld [vmem:[%s225_s28] sm:$0x1f] }
  0xe2   : > { %2035 = vmatpush3.bf16.msk.msra.mxu1 %vm2576_vm5, %v3369_v14  ;;  %1250 = vmatprep.mubr.f32.mxu1 %v3375_v18  ;;  %v1259_v53 = vrot.slane %v261_v47, 7  ;;  %v1284_v54 = vrot.slane %v261_v47, 4  ;;  %v1332_v29 = vrot.slane %v261_v47, 5 }
  0xe3   : > { %2037 = vmatprep.subr.msk.bf16.mxu1 %vm2591_vm10, %v3369_v14 }
  0xe4   : > { %2015 = vmatpush3.bf16.msra.mxu0 %v2014_v60 }
  0xe5   : > { %2017 = vmatprep.subr.bf16.mxu0 %v2016_v42  ;;  %v1287_v42 = vrot.slane %v261_v47, 3 }
  0xe6   : > { %2039 = vmatpush3.bf16.msk.msra.mxu1 %vm2606_vm11, %v3369_v14  ;;  %vm1314_vm11 = vcmp.ne.s32.totalorder %v3392_v28, 0 }
  0xe7   : > { %2041 = vmatprep.subr.msk.bf16.mxu1 %vm2623_vm0, %v3369_v14  ;;  %vm1364_vm0 = vcmask 1040384  }
  0xe8   : > { %2019 = vmatpush3.bf16.msra.mxu0 %v2018_v49 }
  0xe9   : > { %2021 = vmatprep.subr.bf16.mxu0 %v2020_v25 }
  0xea   : > { %2043 = vmatpush3.bf16.msk.msra.mxu1 %vm2636_vm1, %v3369_v14  ;;  %vm1366_vm1 = vcmask 1041408  }
  0xeb   : > { %2045 = vmatprep.subr.msk.bf16.mxu1 %vm2669_vm8, %v3369_v14  ;;  %vm1368_vm8 = vcmask 1042432  }
  0xec   : > { %2023 = vmatpush3.bf16.msra.mxu0 %v2022_v58 }
  0xed   : > { %2025 = vmatprep.subr.bf16.mxu0 %v2024_v33 }
  0xee   : > { %2047 = vmatpush3.bf16.msk.msra.mxu1 %vm2684_vm9, %v3369_v14  ;;  %vm1370_vm9 = vcmask 1043456  }
  0xef   : > { %2049 = vmatprep.subr.msk.bf16.mxu1 %vm2718_vm14, %v3369_v14  ;;  %vm1372_vm14 = vcmask 1044480  }
  0xf0   : > { %2027 = vmatpush3.bf16.msra.mxu0 %v2026_v39 }
  0xf1   : > { %2029 = vmatprep.subr.bf16.mxu0 %v2028_v27 }
  0xf2   : > { %2051 = vmatpush3.bf16.msk.msra.mxu1 %vm2743_vm3, %v3369_v14  ;;  %vm1374_vm3 = vcmask 1045504  }
  0xf3   : > { %2053 = vmatprep.subr.msk.bf16.mxu1 %vm2771_vm12, %v3369_v14  ;;  %vm1376_vm12 = vcmask 1046528  }
  0xf4   : > { %2031 = vmatpush3.bf16.msra.mxu0 %v2030_v10 }
  0xf6   : > { %2055 = vmatpush3.bf16.msk.msra.mxu1 %vm3372_vm13, %v3369_v14 }
  0xf7   : > { %1148 = vmatmul.mubr.f32.vlgmr.msra.gmra.mrb[4].mxu0 %v2920_v26  ;;  %2057 = vmatprep.subr.msk.bf16.mxu1 %vm3374_vm15, %v3369_v14 }
  0xfa   : > { %2059 = vmatpush3.bf16.msk.msra.mxu1 %vm3377_vm2, %v3369_v14 }
  0xfb   : > { %2061 = vmatprep.subr.msk.bf16.mxu1 %vm2877_vm6, %v3369_v14  ;;  %vm1378_vm6 = vcmask 64512  }
  0xfe   : > { %2063 = vmatpush3.bf16.msk.msra.mxu1 %vm2899_vm7, %v3369_v14  ;;  %vm1382_vm7 = vcmask 7168  }
 0x101   : > { %1252 = vmatmul.mubr.f32.vlgmr.msra.gmra.mrb[4].mxu1 %v2920_v26 }
 0x18a   : > { %v1694_v8 = vpop.f32.mrb[0].mxu0 }
 0x18b   : > { %v1695_v50 = vpop.f32.mrb[1].mxu0 }
 0x18c   : > { %v1696_v11 = vadd.f32 %v1695_v50, %v1694_v8 }
 0x194   : > { %v1729_v52 = vpop.f32.mrb[0].mxu1 }
 0x195   : > { %v1730_v22 = vpop.f32.mrb[1].mxu1 }
 0x196   : > { %v1731_v1 = vadd.f32 %v1730_v22, %v1729_v52 }
 0x198   : > { %v736_v31 = vadd.f32 %v1731_v1, %v1696_v11 }
 0x1aa   : > { %v1764_v5 = vpop.f32.mrb[2].mxu0 }
 0x1ab   : > { %v1765_v6 = vpop.f32.mrb[3].mxu0 }
 0x1ac   : > { %v1766_v30 = vadd.f32 %v1765_v6, %v1764_v5 }
 0x1ae   : > { %v874_v20 = vadd.f32 %v1766_v30, %v736_v31 }
 0x1b4   : > { %v1799_v34 = vpop.f32.mrb[2].mxu1 }
 0x1b5   : > { %v1800_v37 = vpop.f32.mrb[3].mxu1 }
 0x1b6   : > { %v1801_v43 = vadd.f32 %v1800_v37, %v1799_v34 }
 0x1b8   : > { %v982_v2 = vadd.f32 %v1801_v43, %v874_v20  ;;  %v3393_v20 = vmov 0.0  }
 0x1b9   : > { %v1654_v34 = vsel %vm1314_vm11, 1.0, %v3393_v20 }
 0x1ca   : > { %v1834_v44 = vpop.f32.mrb[4].mxu0 }
 0x1cb   : > { %v1835_v45 = vpop.f32.mrb[5].mxu0 }
 0x1cc   : > { %v1836_v26 = vadd.f32 %v1835_v45, %v1834_v44 }
 0x1ce   : > { %v1150_v55 = vadd.f32 %v1836_v26, %v982_v2 }
 0x1d4   : > { %v1869_v48 = vpop.f32.mrb[4].mxu1 }
 0x1d5   : > { %v1870_v16 = vpop.f32.mrb[5].mxu1 }
 0x1d6   : > { %v1871_v60 = vadd.f32 %v1870_v16, %v1869_v48 }
 0x1d8   : > { %v1254_v57 = vadd.f32 %v1871_v60, %v1150_v55 }
 0x1da   : > { %v1257_v4 = vmul.f32 %v1254_v57, %v261_v47  ;;  %v1261_v49 = vmul.f32 %v1259_v53, %v1254_v57  ;;  %v1286_v14 = vmul.f32 %v1284_v54, %v1254_v57  ;;  %v1289_v15 = vmul.f32 %v1287_v42, %v1254_v57 }
 0x1db   : > { %v1317_v58 = vsub.f32 %v1254_v57, %v1259_v53  ;;  %v1334_v62 = vsub.f32 %v1254_v57, %v1332_v29  ;;  %v1362_v42 = vrot.slane %v1654_v34, 5 }
 0x1dc   : > { %v1264_v38 = vrot.slane %v1257_v4, 7  ;;  %v1268_v35 = vrot.slane %v1261_v49, 1  ;;  %v1291_v17 = vrot.slane %v1286_v14, 7  ;;  %v1295_v19 = vrot.slane %v1289_v15, 1 }
 0x1dd   : > { %v1318_v41 = vand.u32 2147483647, %v1317_v58  ;;  %v1320_v33 = vmul.f32 0.5, %v1317_v58  ;;  %v1335_v46 = vand.u32 2147483647, %v1334_v62  ;;  %v1337_v51 = vmul.f32 0.5, %v1334_v62 }
 0x1de   : > { %v1270_v0 = vsub.f32 %v1257_v4, %v1268_v35  ;;  %v1293_v9 = vsub.f32 %v1289_v15, %v1291_v17  ;;  %v1297_v23 = vsub.f32 %v1286_v14, %v1295_v19  ;;  %v1266_v12 = vsub.f32 %v1261_v49, %v1264_v38 }
 0x1df   : > { %v1321_v39 = vmul.f32 %v1320_v33, %v1317_v58  ;;  %v1655_v24 = vadd.f32 -0.5, %v1318_v41  ;;  %vm1319_vm5 = vcmp.lt.f32.partialorder %v1318_v41, 1.0  ;;  %v1338_v27 = vmul.f32 %v1337_v51, %v1334_v62 }
 0x1e0   : > { %v1272_v32 = vrot.slane %v1270_v0, 7  ;;  %v1299_v59 = vrot.slane %v1293_v9, 3  ;;  %v1302_v18 = vrot.slane %v1297_v23, 2  ;;  %v1656_v56 = vadd.f32 -0.5, %v1335_v46 }
 0x1e1   : > { %vm1336_vm10 = vcmp.lt.f32.partialorder %v1335_v46, 1.0  ;;  %v1323_v50 = vsel %vm1319_vm5, %v1321_v39, %v1655_v24 }
 0x1e2   : > { %v1274_v13 = vsel %vm1262_vm4, %v1266_v12, %v1272_v32  ;;  %v1304_v61 = vsel %vm1262_vm4, %v1299_v59, %v1302_v18  ;;  %v1340_v52 = vsel %vm1336_vm10, %v1338_v27, %v1656_v56  ;;  %v1325_v22 = vrot.slane %v1323_v50, 1 }
 0x1e3   : > { %v1276_v7 = vand.u32 2147483647, %v1274_v13  ;;  %v1306_v21 = vand.u32 2147483647, %v1304_v61  ;;  %v1342_v1 = vrot.slane %v1340_v52, 1  ;;  %v1275_v2 = vmax.f32 %v1274_v13, 0.0 }
 0x1e4   : > { %v1327_v31 = vadd.f32 %v1325_v22, %v1323_v50  ;;  %v1305_v45 = vmax.f32 %v1304_v61, 0.0 }
 0x1e5   : > { %v1277_v63 = vsub.f32 0.0, %v1276_v7  ;;  %v1307_v25 = vsub.f32 0.0, %v1306_v21  ;;  %v1344_v5 = vadd.f32 %v1342_v1, %v1340_v52 }
 0x1e6   : > { %v1329_v6 = vrot.slane %v1327_v31, 1 }
 0x1e7   : > { %v1278_v36 = vmul.f32 1.442695, %v1277_v63  ;;  %v1308_v40 = vmul.f32 1.442695, %v1307_v25  ;;  %v1346_v37 = vrot.slane %v1344_v5, 4 }
 0x1e8   : > { %v1331_v47 = vmul.f32 %v1654_v34, %v1329_v6 }
 0x1e9   : > { %2122 = vpow2.f32 %v1278_v36  ;;  %v1348_v16 = vmul.f32 %v1654_v34, %v1346_v37 }
 0x1ea   : > { %2124 = vpow2.f32 %v1308_v40  ;;  %v1356_v54 = vrot.slane %v1331_v47, 7 }
 0x1eb   : > { %v1359_v57 = vrot.slane %v1348_v16, 7 }
 0x1f3   : > { %v2123_v3 = vpop.eup %2122 }
 0x1f4   : > { %v2125_v10 = vpop.eup %2124  ;;  %v1280_v8 = vadd.f32 1.0, %v2123_v3 }
 0x1f5   : > { %v1310_v11 = vadd.f32 1.0, %v2125_v10 }
 0x1f6   : > { %2126 = vlog2.f32 %v1280_v8 }
 0x1f7   : > { %2128 = vlog2.f32 %v1310_v11 }
 0x200   : > { %v2127_v30 = vpop.eup %2126 }
 0x201   : > { %v2129_v43 = vpop.eup %2128  ;;  %v1282_v44 = vmul.f32 0.6931472, %v2127_v30 }
 0x202   : > { %v1312_v26 = vmul.f32 0.6931472, %v2129_v43 }
 0x203   : > { %v1283_v55 = vadd.f32 %v1282_v44, %v1275_v2 }
 0x204   : > { %v1313_v48 = vadd.f32 %v1312_v26, %v1305_v45 }
 0x205   : > { %v1350_v60 = vrot.slane %v1283_v55, 1 }
 0x206   : > { %v1353_v53 = vrot.slane %v1313_v48, 1 }
 0x208   : > { %v1365_v4 = vsel %vm1364_vm0, %v1350_v60, %v1353_v53 }
 0x209   : > { %v1367_v49 = vsel %vm1366_vm1, %v1365_v4, %v1356_v54 }
 0x20a   : > { %v1369_v14 = vsel %vm1368_vm8, %v1367_v49, %v1359_v57 }
 0x20b   : > { %v1371_v15 = vsel %vm1370_vm9, %v1369_v14, %v1362_v42 }
 0x20c   : > { %v1373_v38 = vsel %vm1372_vm14, %v1371_v15, %v1362_v42 }
 0x20d   : > { %v1375_v35 = vsel %vm1374_vm3, %v1373_v38, 0.0 }
 0x20e   : > { %v1377_v17 = vsel %vm1376_vm12, %v1375_v35, 0.0 }
 0x20f   : > { %v1379_v19 = vsel %vm1378_vm6, %v1377_v17, 0.0 }
 0x210   : > { %1380 = vadd.xlane.f32.xlu0 %v1379_v19 }
 0x29d   : > { %v1381_v0 = vpop.xlane.xlu0 %1380 }
 0x29e   : > { %1383 = vst.msk [vmem:[%s257_s7] sm:$0xff] %vm1382_vm7, %v1381_v0 }
 0x29f   : > { %2233 = shalt.err (!%p2230_p10)
}
 0x2a0   : > { %s2234_s10 = scalar_lea.hbm %s3191_s5, 128  ;;  %s2238_s8 = scalar_lea.hbm %s3238_s3, 256 }
 0x2a1   : > { %p2235_p6 = scmp.ne.s32.totalorder %s3191_s5, %s2234_s10  ;;  %p2239_p5 = scmp.lt.u32.totalorder %s3191_s5, %s3238_s3 }
 0x2a2   : > { %p2240_p1 = scmp.lt.u32.totalorder %s2238_s8, %s2234_s10  ;;  %p2242_p2 = scmp.lt.u32.totalorder %s2234_s10, %s3191_s5 }
 0x2a3   : > { %p2236_p4 = pnand %p2235_p6, %p3394_p7 }
 0x2a4   : > { %p2241_p13 = por %p2240_p1, %p2239_p5 }
 0x2a5   : > { %p2237_p3 = pneg %p2236_p4 }
 0x2a6   : > { %p2243_p9 = por %p2242_p2, %p2241_p13 }
 0x2a8   : > { %p2244_p0 = pnand %p2243_p9, %p2237_p3 }
 0x2aa   : > { %2247 = shalt.err (!%p2244_p0)
}
 0x2ab   : > { %2070 = dma.vmem_to_hbm [thread:$0]  (%p3394_p7), %s3193_s4, 128, %s3191_s5, %s1385_s9  }
 0x2ac PF: > { %s1410_s22 = sand.u32 1, %s2278_s12   ;;  %p3395_p11 = scmp.ne.s32.totalorder %s3300_s24, 0 }
 0x2ad   : > { %p3396_p12 = scmp.ge.s32.totalorder %s2290_s15, 2  ;;  %s1411_s28 = scalar_lea.sflag [#allocation4], %s1410_s22 }
 0x2af   : > { %p2083_p8 = pnand %p3396_p12, %p3395_p11 }
 0x2b1   : > { %2273 = dma.done.wait (!%p2083_p8), %s1411_s28, 128  }
 0x2b2   : > { %2275 = vsyncadd (!%p2083_p8), %s1411_s28, 4294967168  ;;  %p19_p10 = scmp.ge.s32.totalorder %s2343_s18, 4   ;;  %s3397_s12 = smov %s2282_s13 }
 0x2b3   : > { %s3398_s13 = smov %s2286_s14  ;;  %s3399_s14 = smov %s2355_s21 }
 0x2b4   : > { %s3400_s15 = smov %s2343_s18  ;;  %21 = sbr.rel (!%p19_p10) target bundleno = 7 (0x7), region = 101 }
 0x2bb   :  { %1416 = vsyncpa [#allocation3], 1 }
 0x2bc   :  { %1418 = vsyncpa [#allocation3 + $0x1], 1 }
 0x2bd   :  { %1419 = vsyncpa [#allocation6], 1 }
 0x2be   :  { %1421 = vsyncpa [#allocation6 + $0x1], 1 }
 0x2bf   :  { %1422 = vsyncpa [#allocation4], 1 }
 0x2c0   :  { %1424 = vsyncpa [#allocation4 + $0x1], 1 }

</bundles_post_ra>
